<compile_context>
chip_gen: v5e
topology: v5e:2x2
jax: 0.10.0
libtpu: 0.0.40
codegen_flags: <defaults>
</compile_context>

<pallas_src>
import functools

import jax
import jax.numpy as jnp
import numpy as np
from jax import lax
from jax.experimental import pallas as pl
from jax.experimental.pallas import tpu as pltpu


def _round_up(x, m):
    return ((x + m - 1) // m) * m


def _vmem_capacity_bytes():
    try:
        return int(pltpu.get_tpu_info().vmem_capacity_bytes)
    except Exception:
        return 64 * 1024 * 1024          # conservative fallback (v7x physical VMEM)


def _pick_tiling(N, Mp, Wp, C_in, C_out_p):
    """Shape/generation-aware tile pick: batch-fold Bt, halo S, block width Lb."""
    S = _round_up(Wp + 1, 128)           # halo room (max |tap shift|), lane aligned
    cap = _vmem_capacity_bytes()
    budget = max(24 << 20, int(cap * 0.45))
    # rough per-column f32 bytes resident per step:
    #   4 plane blocks (double-buffered) + output block (double-buffered)
    #   + y1 staging scratch + y1/y2 accumulators + operand staging
    per_col = 4 * (10 * C_in + 10 * C_out_p)
    max_cols = max(_round_up(Mp, 128) + 2 * S, budget // per_col)
    bt = 1
    for d in range(1, N + 1):
        if N % d:
            continue
        if N >= 2 and N // d < 2:        # keep >=2 grid steps (v7x megacore)
            continue
        if _round_up(d * Mp, 128) + 2 * S <= max_cols:
            bt = d
    Lb = _round_up(bt * Mp, 128) + 2 * S
    est = per_col * Lb + 8 * 9 * C_out_p * (C_in + C_out_p) + (1 << 20)
    vmem_limit = int(min(max(cap - (4 << 20), 32 << 20), max(32 << 20, 2 * est)))
    return bt, S, Lb, vmem_limit


def _down_block_kernel(p00_ref, p01_ref, p10_ref, p11_ref, mask_ref,
                       w1_ref, b1_ref, a1_ref, w2_ref, b2_ref, a2_ref,
                       o_ref, ypad_ref, *, Wp, S, W1, W2):
    """One block of Bt images, plane layout (one spare row/col per image).

    p??_ref : (C_in, Lb)          parity planes of the padded input, lane-dense
    mask_ref: (1, W1)             1.0 on real output pixels, 0.0 elsewhere
    w1_ref  : (9, C_out_p, C_in)  conv1 per-tap weight matrices
    w2_ref  : (9, C_out_p, C_out_p) conv2 per-tap weight matrices
    b*_ref, a*_ref : (C_out_p, 1) bias / PReLU alpha
    o_ref   : (C_out_p, W2)       conv2 output slab (plane-layout columns)
    ypad_ref: (C_out_p, Lb)       conv1 activation with a zeroed left halo
    """
    planes = (p00_ref, p01_ref, p10_ref, p11_ref)
    C_out_p = o_ref.shape[0]

    # ---- conv1 (stride 2, pad 1): 9 per-tap MXU matmuls over constant ------
    # lane-shifted parity-plane slices (no im2col slab, no masks).
    y1 = jnp.zeros((C_out_p, W1), jnp.float32)
    for ky in range(3):
        for kx in range(3):
            p = planes[(ky % 2) * 2 + (kx % 2)]
            s = (ky // 2) * Wp + (kx // 2)
            y1 = y1 + jnp.dot(w1_ref[ky * 3 + kx], p[:, s:s + W1],
                              preferred_element_type=jnp.float32)
    y1 = y1 + b1_ref[...]
    y1 = jnp.where(y1 >= 0.0, y1, a1_ref[...] * y1)          # per-channel PReLU
    # Zero every non-image column (spare row Ho / col Wo / tail pad): this is
    # exactly the zero halo conv2 needs, so conv2 taps need no border masks.
    y1 = y1 * mask_ref[...]

    ypad_ref[:, :S] = jnp.zeros((C_out_p, S), jnp.float32)   # left halo = zeros
    ypad_ref[:, S:] = y1

    # ---- conv2 (stride 1, pad 1): 9 per-tap matmuls over shifted y1 slices --
    y2 = jnp.zeros((C_out_p, W2), jnp.float32)
    for ky in range(3):
        for kx in range(3):
            s = (ky - 1) * Wp + (kx - 1)
            y2 = y2 + jnp.dot(w2_ref[ky * 3 + kx],
                              ypad_ref[:, S + s:S + s + W2],
                              preferred_element_type=jnp.float32)
    y2 = y2 + b2_ref[...]
    y2 = jnp.where(y2 >= 0.0, y2, a2_ref[...] * y2)

    # One unmasked, lane-dense slab store (W2 is a multiple of 128).
    o_ref[...] = y2.astype(o_ref.dtype)


def downsampling_block(x, w1, b1, a1, w2, b2, a2):
    """x: (N, C_in, H, W) f32 NCHW.  Returns (N, C_out, ceil(H/2), ceil(W/2))."""
    N, C_in, H, W = x.shape
    C_out = w1.shape[0]
    Ho = (H - 1) // 2 + 1
    Wo = (W - 1) // 2 + 1
    Hp, Wp = Ho + 1, Wo + 1              # plane layout: one spare row / col
    Mp = Hp * Wp
    C_out_p = _round_up(C_out, 8)        # sublane-aligned channel rows

    Bt, S, Lb, vmem_limit = _pick_tiling(N, Mp, Wp, C_in, C_out_p)
    G = N // Bt
    W1 = Lb - S                          # conv1 result width (lane aligned)
    W2 = W1 - S                          # conv2 result width (lane aligned, >= Bt*Mp)

    # ---- input prep: 4 parity planes of the padded input (~1x input bytes) --
    x_pad = jnp.pad(x, ((0, 0), (0, 0), (1, 2 * Ho + 1 - H), (1, 2 * Wo + 1 - W)))
    planes = []
    for py in range(2):
        for px in range(2):
            p = x_pad[:, :, py:py + 2 * Hp:2, px:px + 2 * Wp:2]   # (N,C_in,Hp,Wp)
            p = jnp.transpose(p, (1, 0, 2, 3)).reshape(C_in, G, Bt * Mp)
            p = jnp.pad(p, ((0, 0), (0, 0), (0, Lb - Bt * Mp)))
            planes.append(p.reshape(C_in, G * Lb))

    # ---- weights as per-tap matmul matrices, padded to aligned C_out --------
    po = C_out_p - C_out
    w1_p = jnp.pad(w1, ((0, po), (0, 0), (0, 0), (0, 0)))
    w2_p = jnp.pad(w2, ((0, po), (0, po), (0, 0), (0, 0)))
    w1_r = jnp.transpose(w1_p, (2, 3, 0, 1)).reshape(9, C_out_p, C_in)
    w2_r = jnp.transpose(w2_p, (2, 3, 0, 1)).reshape(9, C_out_p, C_out_p)
    b1_r = jnp.pad(b1, (0, po)).reshape(C_out_p, 1)
    a1_r = jnp.pad(a1, (0, po)).reshape(C_out_p, 1)
    b2_r = jnp.pad(b2, (0, po)).reshape(C_out_p, 1)
    a2_r = jnp.pad(a2, (0, po)).reshape(C_out_p, 1)

    # ---- host-precomputed, grid-constant validity mask (no in-kernel iota) --
    cols = np.arange(W1)
    q = cols % Mp
    valid = ((cols // Mp) < Bt) & ((q // Wp) < Ho) & ((q % Wp) < Wo)
    mask = jnp.asarray(valid, dtype=x.dtype).reshape(1, W1)

    kernel = functools.partial(_down_block_kernel, Wp=Wp, S=S, W1=W1, W2=W2)
    const2 = lambda i: (0, 0)
    const3 = lambda i: (0, 0, 0)
    out = pl.pallas_call(
        kernel,
        out_shape=jax.ShapeDtypeStruct((G, C_out_p, W2), x.dtype),
        grid=(G,),
        in_specs=[pl.BlockSpec((C_in, Lb), lambda i: (0, i))] * 4 + [
            pl.BlockSpec((1, W1), const2),
            pl.BlockSpec((9, C_out_p, C_in), const3),
            pl.BlockSpec((C_out_p, 1), const2),
            pl.BlockSpec((C_out_p, 1), const2),
            pl.BlockSpec((9, C_out_p, C_out_p), const3),
            pl.BlockSpec((C_out_p, 1), const2),
            pl.BlockSpec((C_out_p, 1), const2),
        ],
        out_specs=pl.BlockSpec((None, C_out_p, W2), lambda i: (i, 0, 0)),
        scratch_shapes=[pltpu.VMEM((C_out_p, Lb), jnp.float32)],
        compiler_params=pltpu.CompilerParams(
            dimension_semantics=("parallel",),
            vmem_limit_bytes=vmem_limit,
        ),
    )(*planes, mask, w1_r, b1_r, a1_r, w2_r, b2_r, a2_r)

    # ---- untangle the (small) plane-layout slab into NCHW --------------------
    out = out[:, :C_out, :Bt * Mp].reshape(G, C_out, Bt, Mp)
    out = jnp.transpose(out, (0, 2, 1, 3)).reshape(N, C_out, Hp, Wp)
    return out[:, :, :Ho, :Wo]


def _reference(x, w1, b1, a1, w2, b2, a2):
    """Pure-JAX reference matching PyTorch semantics (NCHW, OIHW)."""
    dn = ("NCHW", "OIHW", "NCHW")
    y = lax.conv_general_dilated(x, w1, (2, 2), ((1, 1), (1, 1)),
                                 dimension_numbers=dn,
                                 precision=lax.Precision.HIGHEST)
    y = y + b1[None, :, None, None]
    y = jnp.where(y >= 0, y, a1[None, :, None, None] * y)
    y = lax.conv_general_dilated(y, w2, (1, 1), ((1, 1), (1, 1)),
                                 dimension_numbers=dn,
                                 precision=lax.Precision.HIGHEST)
    y = y + b2[None, :, None, None]
    y = jnp.where(y >= 0, y, a2[None, :, None, None] * y)
    return y


if __name__ == "__main__":
    N, C_in, C_out, H, W = 2, 4, 8, 16, 16

    key = jax.random.PRNGKey(0)
    kx, kw1, kb1, kw2, kb2 = jax.random.split(key, 5)

    x = jax.random.normal(kx, (N, C_in, H, W), jnp.float32)
    # deterministic synthetic parameters (shapes from nn.Conv2d / nn.PReLU)
    w1 = 0.1 * jax.random.normal(kw1, (C_out, C_in, 3, 3), jnp.float32)   # OIHW
    b1 = 0.1 * jax.random.normal(kb1, (C_out,), jnp.float32)
    a1 = jnp.full((C_out,), 0.25, jnp.float32)                            # PReLU default
    w2 = 0.1 * jax.random.normal(kw2, (C_out, C_out, 3, 3), jnp.float32)  # OIHW
    b2 = 0.1 * jax.random.normal(kb2, (C_out,), jnp.float32)
    a2 = jnp.full((C_out,), 0.25, jnp.float32)

    y = jax.block_until_ready(
        jax.jit(downsampling_block)(x, w1, b1, a1, w2, b2, a2))
    y_ref = jax.block_until_ready(_reference(x, w1, b1, a1, w2, b2, a2))

    assert y.shape == (N, C_out, H // 2, W // 2), y.shape
    np.testing.assert_allclose(np.asarray(y), np.asarray(y_ref),
                               rtol=1e-3, atol=1e-4)
    print("KERNEL_OK")
</pallas_src>

<mosaic_0001>
module attributes {stable_mosaic.version = 11 : i64} {
  func.func @_down_block_kernel(%arg0: i32, %arg1: memref<4x384xf32, #tpu.memory_space<vmem>>, %arg2: memref<4x384xf32, #tpu.memory_space<vmem>>, %arg3: memref<4x384xf32, #tpu.memory_space<vmem>>, %arg4: memref<4x384xf32, #tpu.memory_space<vmem>>, %arg5: memref<1x256xf32, #tpu.memory_space<vmem>>, %arg6: memref<9x8x4xf32, #tpu.memory_space<vmem>>, %arg7: memref<8x1xf32, #tpu.memory_space<vmem>>, %arg8: memref<8x1xf32, #tpu.memory_space<vmem>>, %arg9: memref<9x8x8xf32, #tpu.memory_space<vmem>>, %arg10: memref<8x1xf32, #tpu.memory_space<vmem>>, %arg11: memref<8x1xf32, #tpu.memory_space<vmem>>, %arg12: memref<1x8x128xf32, #tpu.memory_space<vmem>>, %arg13: memref<8x384xf32, #tpu.memory_space<vmem>>) attributes {dimension_semantics = [#tpu.dimension_semantics<parallel>], iteration_bounds = array<i64: 2>, scalar_prefetch = 0 : i64, scratch_operands = 1 : i64, tpu.core_type = #tpu.core_type<tc>, window_params = [{transform_indices = @transform_0, window_bounds = array<i64: 4, 384>}, {transform_indices = @transform_1, window_bounds = array<i64: 4, 384>}, {transform_indices = @transform_2, window_bounds = array<i64: 4, 384>}, {transform_indices = @transform_3, window_bounds = array<i64: 4, 384>}, {pipeline_mode = #tpu.pipeline_mode<synchronous>, transform_indices = @transform_4, window_bounds = array<i64: 1, 256>}, {pipeline_mode = #tpu.pipeline_mode<synchronous>, transform_indices = @transform_5, window_bounds = array<i64: 9, 8, 4>}, {pipeline_mode = #tpu.pipeline_mode<synchronous>, transform_indices = @transform_6, window_bounds = array<i64: 8, 1>}, {pipeline_mode = #tpu.pipeline_mode<synchronous>, transform_indices = @transform_7, window_bounds = array<i64: 8, 1>}, {pipeline_mode = #tpu.pipeline_mode<synchronous>, transform_indices = @transform_8, window_bounds = array<i64: 9, 8, 8>}, {pipeline_mode = #tpu.pipeline_mode<synchronous>, transform_indices = @transform_9, window_bounds = array<i64: 8, 1>}, {pipeline_mode = #tpu.pipeline_mode<synchronous>, transform_indices = @transform_10, window_bounds = array<i64: 8, 1>}, {transform_indices = @transform_11, window_bounds = array<i64: 1, 8, 128>}]} {
    %cst = arith.constant 0.000000e+00 : f32
    %0 = vector.broadcast %cst : f32 to vector<8x256xf32>
    %c0 = arith.constant 0 : index
    %c0_0 = arith.constant 0 : index
    %c0_1 = arith.constant 0 : index
    %1 = vector.load %arg6[%c0, %c0_0, %c0_1] : memref<9x8x4xf32, #tpu.memory_space<vmem>>, vector<1x8x4xf32>
    %2 = vector.shape_cast %1 : vector<1x8x4xf32> to vector<8x4xf32>
    %c0_2 = arith.constant 0 : index
    %c0_3 = arith.constant 0 : index
    %3 = vector.load %arg1[%c0_2, %c0_3] : memref<4x384xf32, #tpu.memory_space<vmem>>, vector<4x256xf32>
    %cst_4 = arith.constant dense<0.000000e+00> : vector<8x256xf32>
    %4 = tpu.matmul %2, %3, %cst_4 {dimension_numbers = #tpu.dot_dimension_numbers<[1], [0], [0], [1], [0, 0, 1, 1], [], []>} : vector<8x4xf32>, vector<4x256xf32>, vector<8x256xf32> -> vector<8x256xf32>
    %5 = arith.addf %0, %4 : vector<8x256xf32>
    %c1 = arith.constant 1 : index
    %c0_5 = arith.constant 0 : index
    %c0_6 = arith.constant 0 : index
    %6 = vector.load %arg6[%c1, %c0_5, %c0_6] : memref<9x8x4xf32, #tpu.memory_space<vmem>>, vector<1x8x4xf32>
    %7 = vector.shape_cast %6 : vector<1x8x4xf32> to vector<8x4xf32>
    %c0_7 = arith.constant 0 : index
    %c0_8 = arith.constant 0 : index
    %8 = vector.load %arg2[%c0_7, %c0_8] : memref<4x384xf32, #tpu.memory_space<vmem>>, vector<4x256xf32>
    %cst_9 = arith.constant dense<0.000000e+00> : vector<8x256xf32>
    %9 = tpu.matmul %7, %8, %cst_9 {dimension_numbers = #tpu.dot_dimension_numbers<[1], [0], [0], [1], [0, 0, 1, 1], [], []>} : vector<8x4xf32>, vector<4x256xf32>, vector<8x256xf32> -> vector<8x256xf32>
    %10 = arith.addf %5, %9 : vector<8x256xf32>
    %c2 = arith.constant 2 : index
    %c0_10 = arith.constant 0 : index
    %c0_11 = arith.constant 0 : index
    %11 = vector.load %arg6[%c2, %c0_10, %c0_11] : memref<9x8x4xf32, #tpu.memory_space<vmem>>, vector<1x8x4xf32>
    %12 = vector.shape_cast %11 : vector<1x8x4xf32> to vector<8x4xf32>
    %c0_12 = arith.constant 0 : index
    %c1_13 = arith.constant 1 : index
    %13 = vector.load %arg1[%c0_12, %c1_13] : memref<4x384xf32, #tpu.memory_space<vmem>>, vector<4x256xf32>
    %cst_14 = arith.constant dense<0.000000e+00> : vector<8x256xf32>
    %14 = tpu.matmul %12, %13, %cst_14 {dimension_numbers = #tpu.dot_dimension_numbers<[1], [0], [0], [1], [0, 0, 1, 1], [], []>} : vector<8x4xf32>, vector<4x256xf32>, vector<8x256xf32> -> vector<8x256xf32>
    %15 = arith.addf %10, %14 : vector<8x256xf32>
    %c3 = arith.constant 3 : index
    %c0_15 = arith.constant 0 : index
    %c0_16 = arith.constant 0 : index
    %16 = vector.load %arg6[%c3, %c0_15, %c0_16] : memref<9x8x4xf32, #tpu.memory_space<vmem>>, vector<1x8x4xf32>
    %17 = vector.shape_cast %16 : vector<1x8x4xf32> to vector<8x4xf32>
    %c0_17 = arith.constant 0 : index
    %c0_18 = arith.constant 0 : index
    %18 = vector.load %arg3[%c0_17, %c0_18] : memref<4x384xf32, #tpu.memory_space<vmem>>, vector<4x256xf32>
    %cst_19 = arith.constant dense<0.000000e+00> : vector<8x256xf32>
    %19 = tpu.matmul %17, %18, %cst_19 {dimension_numbers = #tpu.dot_dimension_numbers<[1], [0], [0], [1], [0, 0, 1, 1], [], []>} : vector<8x4xf32>, vector<4x256xf32>, vector<8x256xf32> -> vector<8x256xf32>
    %20 = arith.addf %15, %19 : vector<8x256xf32>
    %c4 = arith.constant 4 : index
    %c0_20 = arith.constant 0 : index
    %c0_21 = arith.constant 0 : index
    %21 = vector.load %arg6[%c4, %c0_20, %c0_21] : memref<9x8x4xf32, #tpu.memory_space<vmem>>, vector<1x8x4xf32>
    %22 = vector.shape_cast %21 : vector<1x8x4xf32> to vector<8x4xf32>
    %c0_22 = arith.constant 0 : index
    %c0_23 = arith.constant 0 : index
    %23 = vector.load %arg4[%c0_22, %c0_23] : memref<4x384xf32, #tpu.memory_space<vmem>>, vector<4x256xf32>
    %cst_24 = arith.constant dense<0.000000e+00> : vector<8x256xf32>
    %24 = tpu.matmul %22, %23, %cst_24 {dimension_numbers = #tpu.dot_dimension_numbers<[1], [0], [0], [1], [0, 0, 1, 1], [], []>} : vector<8x4xf32>, vector<4x256xf32>, vector<8x256xf32> -> vector<8x256xf32>
    %25 = arith.addf %20, %24 : vector<8x256xf32>
    %c5 = arith.constant 5 : index
    %c0_25 = arith.constant 0 : index
    %c0_26 = arith.constant 0 : index
    %26 = vector.load %arg6[%c5, %c0_25, %c0_26] : memref<9x8x4xf32, #tpu.memory_space<vmem>>, vector<1x8x4xf32>
    %27 = vector.shape_cast %26 : vector<1x8x4xf32> to vector<8x4xf32>
    %c0_27 = arith.constant 0 : index
    %c1_28 = arith.constant 1 : index
    %28 = vector.load %arg3[%c0_27, %c1_28] : memref<4x384xf32, #tpu.memory_space<vmem>>, vector<4x256xf32>
    %cst_29 = arith.constant dense<0.000000e+00> : vector<8x256xf32>
    %29 = tpu.matmul %27, %28, %cst_29 {dimension_numbers = #tpu.dot_dimension_numbers<[1], [0], [0], [1], [0, 0, 1, 1], [], []>} : vector<8x4xf32>, vector<4x256xf32>, vector<8x256xf32> -> vector<8x256xf32>
    %30 = arith.addf %25, %29 : vector<8x256xf32>
    %c6 = arith.constant 6 : index
    %c0_30 = arith.constant 0 : index
    %c0_31 = arith.constant 0 : index
    %31 = vector.load %arg6[%c6, %c0_30, %c0_31] : memref<9x8x4xf32, #tpu.memory_space<vmem>>, vector<1x8x4xf32>
    %32 = vector.shape_cast %31 : vector<1x8x4xf32> to vector<8x4xf32>
    %c0_32 = arith.constant 0 : index
    %c9 = arith.constant 9 : index
    %33 = vector.load %arg1[%c0_32, %c9] : memref<4x384xf32, #tpu.memory_space<vmem>>, vector<4x256xf32>
    %cst_33 = arith.constant dense<0.000000e+00> : vector<8x256xf32>
    %34 = tpu.matmul %32, %33, %cst_33 {dimension_numbers = #tpu.dot_dimension_numbers<[1], [0], [0], [1], [0, 0, 1, 1], [], []>} : vector<8x4xf32>, vector<4x256xf32>, vector<8x256xf32> -> vector<8x256xf32>
    %35 = arith.addf %30, %34 : vector<8x256xf32>
    %c7 = arith.constant 7 : index
    %c0_34 = arith.constant 0 : index
    %c0_35 = arith.constant 0 : index
    %36 = vector.load %arg6[%c7, %c0_34, %c0_35] : memref<9x8x4xf32, #tpu.memory_space<vmem>>, vector<1x8x4xf32>
    %37 = vector.shape_cast %36 : vector<1x8x4xf32> to vector<8x4xf32>
    %c0_36 = arith.constant 0 : index
    %c9_37 = arith.constant 9 : index
    %38 = vector.load %arg2[%c0_36, %c9_37] : memref<4x384xf32, #tpu.memory_space<vmem>>, vector<4x256xf32>
    %cst_38 = arith.constant dense<0.000000e+00> : vector<8x256xf32>
    %39 = tpu.matmul %37, %38, %cst_38 {dimension_numbers = #tpu.dot_dimension_numbers<[1], [0], [0], [1], [0, 0, 1, 1], [], []>} : vector<8x4xf32>, vector<4x256xf32>, vector<8x256xf32> -> vector<8x256xf32>
    %40 = arith.addf %35, %39 : vector<8x256xf32>
    %c8 = arith.constant 8 : index
    %c0_39 = arith.constant 0 : index
    %c0_40 = arith.constant 0 : index
    %41 = vector.load %arg6[%c8, %c0_39, %c0_40] : memref<9x8x4xf32, #tpu.memory_space<vmem>>, vector<1x8x4xf32>
    %42 = vector.shape_cast %41 : vector<1x8x4xf32> to vector<8x4xf32>
    %c0_41 = arith.constant 0 : index
    %c10 = arith.constant 10 : index
    %43 = vector.load %arg1[%c0_41, %c10] : memref<4x384xf32, #tpu.memory_space<vmem>>, vector<4x256xf32>
    %cst_42 = arith.constant dense<0.000000e+00> : vector<8x256xf32>
    %44 = tpu.matmul %42, %43, %cst_42 {dimension_numbers = #tpu.dot_dimension_numbers<[1], [0], [0], [1], [0, 0, 1, 1], [], []>} : vector<8x4xf32>, vector<4x256xf32>, vector<8x256xf32> -> vector<8x256xf32>
    %45 = arith.addf %40, %44 : vector<8x256xf32>
    %c0_43 = arith.constant 0 : index
    %c0_44 = arith.constant 0 : index
    %46 = vector.load %arg7[%c0_43, %c0_44] : memref<8x1xf32, #tpu.memory_space<vmem>>, vector<8x1xf32>
    %47 = vector.broadcast %46 : vector<8x1xf32> to vector<8x256xf32>
    %48 = arith.addf %45, %47 : vector<8x256xf32>
    %cst_45 = arith.constant 0.000000e+00 : f32
    %49 = vector.broadcast %cst_45 : f32 to vector<8x256xf32>
    %50 = arith.cmpf oge, %48, %49 : vector<8x256xf32>
    %c0_46 = arith.constant 0 : index
    %c0_47 = arith.constant 0 : index
    %51 = vector.load %arg8[%c0_46, %c0_47] : memref<8x1xf32, #tpu.memory_space<vmem>>, vector<8x1xf32>
    %52 = vector.broadcast %51 : vector<8x1xf32> to vector<8x256xf32>
    %53 = arith.mulf %52, %48 : vector<8x256xf32>
    %54 = arith.select %50, %48, %53 : vector<8x256xi1>, vector<8x256xf32>
    %c0_48 = arith.constant 0 : index
    %c0_49 = arith.constant 0 : index
    %55 = vector.load %arg5[%c0_48, %c0_49] : memref<1x256xf32, #tpu.memory_space<vmem>>, vector<1x256xf32>
    %56 = vector.broadcast %55 : vector<1x256xf32> to vector<8x256xf32>
    %57 = arith.mulf %54, %56 : vector<8x256xf32>
    %cst_50 = arith.constant 0.000000e+00 : f32
    %58 = vector.broadcast %cst_50 : f32 to vector<8x128xf32>
    %c0_51 = arith.constant 0 : index
    %c0_52 = arith.constant 0 : index
    %59 = vector.load %arg13[%c0_51, %c0_52] : memref<8x384xf32, #tpu.memory_space<vmem>>, vector<8x128xf32>
    tpu.vector_store %arg13[%c0_51, %c0_52], %58 {strides = array<i32>} : memref<8x384xf32, #tpu.memory_space<vmem>>, vector<8x128xf32>,
    %c0_53 = arith.constant 0 : index
    %c128 = arith.constant 128 : index
    %60 = vector.load %arg13[%c0_53, %c128] : memref<8x384xf32, #tpu.memory_space<vmem>>, vector<8x256xf32>
    tpu.vector_store %arg13[%c0_53, %c128], %57 {strides = array<i32>} : memref<8x384xf32, #tpu.memory_space<vmem>>, vector<8x256xf32>,
    %cst_54 = arith.constant 0.000000e+00 : f32
    %61 = vector.broadcast %cst_54 : f32 to vector<8x128xf32>
    %c0_55 = arith.constant 0 : index
    %c0_56 = arith.constant 0 : index
    %c0_57 = arith.constant 0 : index
    %62 = vector.load %arg9[%c0_55, %c0_56, %c0_57] : memref<9x8x8xf32, #tpu.memory_space<vmem>>, vector<1x8x8xf32>
    %63 = vector.shape_cast %62 : vector<1x8x8xf32> to vector<8x8xf32>
    %c0_58 = arith.constant 0 : index
    %c118 = arith.constant 118 : index
    %64 = vector.load %arg13[%c0_58, %c118] : memref<8x384xf32, #tpu.memory_space<vmem>>, vector<8x128xf32>
    %cst_59 = arith.constant dense<0.000000e+00> : vector<8x128xf32>
    %65 = tpu.matmul %63, %64, %cst_59 {dimension_numbers = #tpu.dot_dimension_numbers<[1], [0], [0], [1], [0, 0, 1, 1], [], []>} : vector<8x8xf32>, vector<8x128xf32>, vector<8x128xf32> -> vector<8x128xf32>
    %66 = arith.addf %61, %65 : vector<8x128xf32>
    %c1_60 = arith.constant 1 : index
    %c0_61 = arith.constant 0 : index
    %c0_62 = arith.constant 0 : index
    %67 = vector.load %arg9[%c1_60, %c0_61, %c0_62] : memref<9x8x8xf32, #tpu.memory_space<vmem>>, vector<1x8x8xf32>
    %68 = vector.shape_cast %67 : vector<1x8x8xf32> to vector<8x8xf32>
    %c0_63 = arith.constant 0 : index
    %c119 = arith.constant 119 : index
    %69 = vector.load %arg13[%c0_63, %c119] : memref<8x384xf32, #tpu.memory_space<vmem>>, vector<8x128xf32>
    %cst_64 = arith.constant dense<0.000000e+00> : vector<8x128xf32>
    %70 = tpu.matmul %68, %69, %cst_64 {dimension_numbers = #tpu.dot_dimension_numbers<[1], [0], [0], [1], [0, 0, 1, 1], [], []>} : vector<8x8xf32>, vector<8x128xf32>, vector<8x128xf32> -> vector<8x128xf32>
    %71 = arith.addf %66, %70 : vector<8x128xf32>
    %c2_65 = arith.constant 2 : index
    %c0_66 = arith.constant 0 : index
    %c0_67 = arith.constant 0 : index
    %72 = vector.load %arg9[%c2_65, %c0_66, %c0_67] : memref<9x8x8xf32, #tpu.memory_space<vmem>>, vector<1x8x8xf32>
    %73 = vector.shape_cast %72 : vector<1x8x8xf32> to vector<8x8xf32>
    %c0_68 = arith.constant 0 : index
    %c120 = arith.constant 120 : index
    %74 = vector.load %arg13[%c0_68, %c120] : memref<8x384xf32, #tpu.memory_space<vmem>>, vector<8x128xf32>
    %cst_69 = arith.constant dense<0.000000e+00> : vector<8x128xf32>
    %75 = tpu.matmul %73, %74, %cst_69 {dimension_numbers = #tpu.dot_dimension_numbers<[1], [0], [0], [1], [0, 0, 1, 1], [], []>} : vector<8x8xf32>, vector<8x128xf32>, vector<8x128xf32> -> vector<8x128xf32>
    %76 = arith.addf %71, %75 : vector<8x128xf32>
    %c3_70 = arith.constant 3 : index
    %c0_71 = arith.constant 0 : index
    %c0_72 = arith.constant 0 : index
    %77 = vector.load %arg9[%c3_70, %c0_71, %c0_72] : memref<9x8x8xf32, #tpu.memory_space<vmem>>, vector<1x8x8xf32>
    %78 = vector.shape_cast %77 : vector<1x8x8xf32> to vector<8x8xf32>
    %c0_73 = arith.constant 0 : index
    %c127 = arith.constant 127 : index
    %79 = vector.load %arg13[%c0_73, %c127] : memref<8x384xf32, #tpu.memory_space<vmem>>, vector<8x128xf32>
    %cst_74 = arith.constant dense<0.000000e+00> : vector<8x128xf32>
    %80 = tpu.matmul %78, %79, %cst_74 {dimension_numbers = #tpu.dot_dimension_numbers<[1], [0], [0], [1], [0, 0, 1, 1], [], []>} : vector<8x8xf32>, vector<8x128xf32>, vector<8x128xf32> -> vector<8x128xf32>
    %81 = arith.addf %76, %80 : vector<8x128xf32>
    %c4_75 = arith.constant 4 : index
    %c0_76 = arith.constant 0 : index
    %c0_77 = arith.constant 0 : index
    %82 = vector.load %arg9[%c4_75, %c0_76, %c0_77] : memref<9x8x8xf32, #tpu.memory_space<vmem>>, vector<1x8x8xf32>
    %83 = vector.shape_cast %82 : vector<1x8x8xf32> to vector<8x8xf32>
    %c0_78 = arith.constant 0 : index
    %c128_79 = arith.constant 128 : index
    %84 = vector.load %arg13[%c0_78, %c128_79] : memref<8x384xf32, #tpu.memory_space<vmem>>, vector<8x128xf32>
    %cst_80 = arith.constant dense<0.000000e+00> : vector<8x128xf32>
    %85 = tpu.matmul %83, %84, %cst_80 {dimension_numbers = #tpu.dot_dimension_numbers<[1], [0], [0], [1], [0, 0, 1, 1], [], []>} : vector<8x8xf32>, vector<8x128xf32>, vector<8x128xf32> -> vector<8x128xf32>
    %86 = arith.addf %81, %85 : vector<8x128xf32>
    %c5_81 = arith.constant 5 : index
    %c0_82 = arith.constant 0 : index
    %c0_83 = arith.constant 0 : index
    %87 = vector.load %arg9[%c5_81, %c0_82, %c0_83] : memref<9x8x8xf32, #tpu.memory_space<vmem>>, vector<1x8x8xf32>
    %88 = vector.shape_cast %87 : vector<1x8x8xf32> to vector<8x8xf32>
    %c0_84 = arith.constant 0 : index
    %c129 = arith.constant 129 : index
    %89 = vector.load %arg13[%c0_84, %c129] : memref<8x384xf32, #tpu.memory_space<vmem>>, vector<8x128xf32>
    %cst_85 = arith.constant dense<0.000000e+00> : vector<8x128xf32>
    %90 = tpu.matmul %88, %89, %cst_85 {dimension_numbers = #tpu.dot_dimension_numbers<[1], [0], [0], [1], [0, 0, 1, 1], [], []>} : vector<8x8xf32>, vector<8x128xf32>, vector<8x128xf32> -> vector<8x128xf32>
    %91 = arith.addf %86, %90 : vector<8x128xf32>
    %c6_86 = arith.constant 6 : index
    %c0_87 = arith.constant 0 : index
    %c0_88 = arith.constant 0 : index
    %92 = vector.load %arg9[%c6_86, %c0_87, %c0_88] : memref<9x8x8xf32, #tpu.memory_space<vmem>>, vector<1x8x8xf32>
    %93 = vector.shape_cast %92 : vector<1x8x8xf32> to vector<8x8xf32>
    %c0_89 = arith.constant 0 : index
    %c136 = arith.constant 136 : index
    %94 = vector.load %arg13[%c0_89, %c136] : memref<8x384xf32, #tpu.memory_space<vmem>>, vector<8x128xf32>
    %cst_90 = arith.constant dense<0.000000e+00> : vector<8x128xf32>
    %95 = tpu.matmul %93, %94, %cst_90 {dimension_numbers = #tpu.dot_dimension_numbers<[1], [0], [0], [1], [0, 0, 1, 1], [], []>} : vector<8x8xf32>, vector<8x128xf32>, vector<8x128xf32> -> vector<8x128xf32>
    %96 = arith.addf %91, %95 : vector<8x128xf32>
    %c7_91 = arith.constant 7 : index
    %c0_92 = arith.constant 0 : index
    %c0_93 = arith.constant 0 : index
    %97 = vector.load %arg9[%c7_91, %c0_92, %c0_93] : memref<9x8x8xf32, #tpu.memory_space<vmem>>, vector<1x8x8xf32>
    %98 = vector.shape_cast %97 : vector<1x8x8xf32> to vector<8x8xf32>
    %c0_94 = arith.constant 0 : index
    %c137 = arith.constant 137 : index
    %99 = vector.load %arg13[%c0_94, %c137] : memref<8x384xf32, #tpu.memory_space<vmem>>, vector<8x128xf32>
    %cst_95 = arith.constant dense<0.000000e+00> : vector<8x128xf32>
    %100 = tpu.matmul %98, %99, %cst_95 {dimension_numbers = #tpu.dot_dimension_numbers<[1], [0], [0], [1], [0, 0, 1, 1], [], []>} : vector<8x8xf32>, vector<8x128xf32>, vector<8x128xf32> -> vector<8x128xf32>
    %101 = arith.addf %96, %100 : vector<8x128xf32>
    %c8_96 = arith.constant 8 : index
    %c0_97 = arith.constant 0 : index
    %c0_98 = arith.constant 0 : index
    %102 = vector.load %arg9[%c8_96, %c0_97, %c0_98] : memref<9x8x8xf32, #tpu.memory_space<vmem>>, vector<1x8x8xf32>
    %103 = vector.shape_cast %102 : vector<1x8x8xf32> to vector<8x8xf32>
    %c0_99 = arith.constant 0 : index
    %c138 = arith.constant 138 : index
    %104 = vector.load %arg13[%c0_99, %c138] : memref<8x384xf32, #tpu.memory_space<vmem>>, vector<8x128xf32>
    %cst_100 = arith.constant dense<0.000000e+00> : vector<8x128xf32>
    %105 = tpu.matmul %103, %104, %cst_100 {dimension_numbers = #tpu.dot_dimension_numbers<[1], [0], [0], [1], [0, 0, 1, 1], [], []>} : vector<8x8xf32>, vector<8x128xf32>, vector<8x128xf32> -> vector<8x128xf32>
    %106 = arith.addf %101, %105 : vector<8x128xf32>
    %c0_101 = arith.constant 0 : index
    %c0_102 = arith.constant 0 : index
    %107 = vector.load %arg10[%c0_101, %c0_102] : memref<8x1xf32, #tpu.memory_space<vmem>>, vector<8x1xf32>
    %108 = vector.broadcast %107 : vector<8x1xf32> to vector<8x128xf32>
    %109 = arith.addf %106, %108 : vector<8x128xf32>
    %cst_103 = arith.constant 0.000000e+00 : f32
    %110 = vector.broadcast %cst_103 : f32 to vector<8x128xf32>
    %111 = arith.cmpf oge, %109, %110 : vector<8x128xf32>
    %c0_104 = arith.constant 0 : index
    %c0_105 = arith.constant 0 : index
    %112 = vector.load %arg11[%c0_104, %c0_105] : memref<8x1xf32, #tpu.memory_space<vmem>>, vector<8x1xf32>
    %113 = vector.broadcast %112 : vector<8x1xf32> to vector<8x128xf32>
    %114 = arith.mulf %113, %109 : vector<8x128xf32>
    %115 = arith.select %111, %109, %114 : vector<8x128xi1>, vector<8x128xf32>
    %c0_106 = arith.constant 0 : index
    %c0_107 = arith.constant 0 : index
    %c0_108 = arith.constant 0 : index
    %116 = vector.load %arg12[%c0_106, %c0_107, %c0_108] : memref<1x8x128xf32, #tpu.memory_space<vmem>>, vector<1x8x128xf32>
    %117 = vector.shape_cast %116 : vector<1x8x128xf32> to vector<8x128xf32>
    %118 = vector.shape_cast %115 : vector<8x128xf32> to vector<1x8x128xf32>
    tpu.vector_store %arg12[%c0_106, %c0_107, %c0_108], %118 {strides = array<i32>} : memref<1x8x128xf32, #tpu.memory_space<vmem>>, vector<1x8x128xf32>,
    return
  }
  func.func @transform_0(%arg0: i32) -> (i32, i32) {
    %c0_i32 = arith.constant 0 : i32
    %c0_i32_0 = arith.constant 0 : i32
    return %c0_i32, %arg0 : i32, i32
  }
  func.func @transform_1(%arg0: i32) -> (i32, i32) {
    %c0_i32 = arith.constant 0 : i32
    %c0_i32_0 = arith.constant 0 : i32
    return %c0_i32, %arg0 : i32, i32
  }
  func.func @transform_2(%arg0: i32) -> (i32, i32) {
    %c0_i32 = arith.constant 0 : i32
    %c0_i32_0 = arith.constant 0 : i32
    return %c0_i32, %arg0 : i32, i32
  }
  func.func @transform_3(%arg0: i32) -> (i32, i32) {
    %c0_i32 = arith.constant 0 : i32
    %c0_i32_0 = arith.constant 0 : i32
    return %c0_i32, %arg0 : i32, i32
  }
  func.func @transform_4(%arg0: i32) -> (i32, i32) {
    %c0_i32 = arith.constant 0 : i32
    %c0_i32_0 = arith.constant 0 : i32
    %c0_i32_1 = arith.constant 0 : i32
    return %c0_i32, %c0_i32_0 : i32, i32
  }
  func.func @transform_5(%arg0: i32) -> (i32, i32, i32) {
    %c0_i32 = arith.constant 0 : i32
    %c0_i32_0 = arith.constant 0 : i32
    %c0_i32_1 = arith.constant 0 : i32
    %c0_i32_2 = arith.constant 0 : i32
    return %c0_i32, %c0_i32_0, %c0_i32_1 : i32, i32, i32
  }
  func.func @transform_6(%arg0: i32) -> (i32, i32) {
    %c0_i32 = arith.constant 0 : i32
    %c0_i32_0 = arith.constant 0 : i32
    %c0_i32_1 = arith.constant 0 : i32
    return %c0_i32, %c0_i32_0 : i32, i32
  }
  func.func @transform_7(%arg0: i32) -> (i32, i32) {
    %c0_i32 = arith.constant 0 : i32
    %c0_i32_0 = arith.constant 0 : i32
    %c0_i32_1 = arith.constant 0 : i32
    return %c0_i32, %c0_i32_0 : i32, i32
  }
  func.func @transform_8(%arg0: i32) -> (i32, i32, i32) {
    %c0_i32 = arith.constant 0 : i32
    %c0_i32_0 = arith.constant 0 : i32
    %c0_i32_1 = arith.constant 0 : i32
    %c0_i32_2 = arith.constant 0 : i32
    return %c0_i32, %c0_i32_0, %c0_i32_1 : i32, i32, i32
  }
  func.func @transform_9(%arg0: i32) -> (i32, i32) {
    %c0_i32 = arith.constant 0 : i32
    %c0_i32_0 = arith.constant 0 : i32
    %c0_i32_1 = arith.constant 0 : i32
    return %c0_i32, %c0_i32_0 : i32, i32
  }
  func.func @transform_10(%arg0: i32) -> (i32, i32) {
    %c0_i32 = arith.constant 0 : i32
    %c0_i32_0 = arith.constant 0 : i32
    %c0_i32_1 = arith.constant 0 : i32
    return %c0_i32, %c0_i32_0 : i32, i32
  }
  func.func @transform_11(%arg0: i32) -> (i32, i32, i32) {
    %c0_i32 = arith.constant 0 : i32
    %c0_i32_0 = arith.constant 0 : i32
    %c0_i32_1 = arith.constant 0 : i32
    return %arg0, %c0_i32, %c0_i32_0 : i32, i32, i32
  }
}

</mosaic_0001>

<bundles_post_ra>
// kernel: downsampling_block.1
= control target key start
LH: loop header
LB: loop body
LE: loop exit
PB: predicated region body
PF: predicated region fallthrough
CT: control target
= control target key end

     0   :  { %s1663_s17 = smov 0   ;;  %s1862_s0 = inlined_call_operand.vmem [shape: f32[4,768], index: 0, kind: input, shape index: {}]   ;;  %s1863_s1 = inlined_call_operand.vmem [shape: f32[4,768], index: 1, kind: input, shape index: {}]   ;;  %s1864_s2 = inlined_call_operand.vmem [shape: f32[4,768], index: 2, kind: input, shape index: {}]   ;;  %s1865_s3 = inlined_call_operand.vmem [shape: f32[4,768], index: 3, kind: input, shape index: {}]   ;;  %s1866_s4 = inlined_call_operand.vmem [shape: f32[1,256], index: 4, kind: input, shape index: {}]   ;;  %s1867_s5 = inlined_call_operand.vmem [shape: f32[9,8,4], index: 5, kind: input, shape index: {}]   ;;  %s1868_s6 = inlined_call_operand.vmem [shape: f32[8,1], index: 6, kind: input, shape index: {}]   ;;  %s1869_s7 = inlined_call_operand.vmem [shape: f32[8,1], index: 7, kind: input, shape index: {}]   ;;  %s1870_s8 = inlined_call_operand.vmem [shape: f32[9,8,8], index: 8, kind: input, shape index: {}]   ;;  %s1871_s9 = inlined_call_operand.vmem [shape: f32[8,1], index: 9, kind: input, shape index: {}]   ;;  %s1872_s10 = inlined_call_operand.vmem [shape: f32[8,1], index: 10, kind: input, shape index: {}]   ;;  %s1873_s11 = inlined_call_operand.vmem [shape: f32[2,8,128], index: 11, kind: output, shape index: {}]  }
   0x1 LB: > { %s1669_s18 = sadd.s32 4294967295, %s1591_s17   ;;  %p1455_p0 = scmp.ge.s32.totalorder %s1591_s17, 1  ;;  %s1591_s17 = sphi %s1663_s17, %s21_s17  }
   0x2   : > { %p371_p1 = scmp.lt.s32.totalorder %s1591_s17, 3 }
   0x4   : > { %p372_p2 = pnand %p1455_p0, %p371_p1 }
   0x5   : > { %s425_s19 = smul.u32 (!%p372_p2), 3, %s1669_s18  ;;  %s1593_s30 = smov (!%p372_p2), 127  }
   0x6   : > { %375 = sbr.rel (%p372_p2) target bundleno = 622 (0x26e), region = 64  ;;  %s1594_s15 = smov (!%p372_p2), 119  }
   0x7   : > { %p426_p3 = scmp.lt.s32.totalorder (!%p372_p2), %s425_s19, 5  ;;  %s1595_s16 = smov (!%p372_p2), 118  }
   0x8   : > { %s1599_s12 = smov (!%p372_p2), 9   ;;  %s1600_s13 = smov (!%p372_p2), 1  }
   0x9   : > { %p449_p4 = scmp.lt.s32.totalorder (!%p372_p2), %s1669_s18, 1 }
   0xb   : > { %s1875_s19 = smov (!%p426_p3, %s425_s19), 5  ;;  %vm466_vm0 = vcmask 1043456   ;;  %v1461_v32 = vld [vmem:[%s1867_s5 + $0x8] sm:$0xff]  ;;  %vm462_vm1 = vcmask 31744   ;;  %v453_v33 = vld [vmem:[%s1867_s5] sm:$0xff]  ;;  %v1475_v34 = vld [vmem:[%s1867_s5 + $0x18] sm:$0xff] }
   0xc   : > { %s1456_s20 = sshll.u32 %s1875_s19, 2  ;;  %vm580_vm2 = vcmask 1039360   ;;  %v1470_v38 = vld [vmem:[%s1867_s5 + $0x10] sm:$0xff]  ;;  %v1480_v42 = vld [vmem:[%s1867_s5 + $0x20] sm:$0xff]  ;;  %v1596_v47 = vmov 0   ;;  %vm831_vm3 = vcmask 973824  }
   0xd   : > { %s1677_s23 = scalar_lea.vmem %s1863_s1, %s1456_s20  ;;  %s1683_s26 = scalar_lea.vmem %s1862_s0, %s1456_s20  ;;  %v1022_v45 = vld [vmem:[%s1868_s6] sm:$0xff]  ;;  %1542 = vset.pattern.permute.xlu0 %v1596_v47  ;;  %1543 = vset.pattern.permute.xlu1 %v1596_v47  ;;  %v1485_v50 = vld [vmem:[%s1867_s5 + $0x28] sm:$0xff]  ;;  %v1490_v51 = vld [vmem:[%s1867_s5 + $0x30] sm:$0xff]  ;;  %vm970_vm4 = vcmask 965632   ;;  %vm1064_vm7 = vcmask 72704   ;;  %vm1067_vm8 = vcmask 64512  }
   0xe   : > { %v457_v0 = vld [vmem:[%s1677_s23] sm:$0xff]  ;;  %v565_v6 = vld [vmem:[%s1683_s26 + $0x8] sm:$0xf]  ;;  %s441_s29 = scalar_lea.vmem %s1864_s2, %s1456_s20  ;;  %s447_s14 = scalar_lea.vmem %s1865_s3, %s1456_s20  ;;  %1584 = vset.pattern.permute.xlu2 %v1596_v47  ;;  %v1495_v57 = vld [vmem:[%s1867_s5 + $0x38] sm:$0xff]  ;;  %vm1095_vm9 = vcmask 80896   ;;  %vm1159_vm10 = vcmask 7168  }
   0xf   : > { %459 = vst [vmem:[#allocation1] ss:$2 sm:$0xff] %v457_v0  ;;  %v454_v1 = vld [vmem:[%s1683_s26] sm:$0xff]  ;;  %v747_v11 = vld [vmem:[%s441_s29 + $0x8] sm:$0xf]  ;;  %s1602_s19 = smov 120  }
  0x10   : > { %570 = vst [vmem:[#allocation1 + $0x10] ss:$2 sm:$0xff] %v565_v6  ;;  %v634_v7 = vld [vmem:[%s441_s29] sm:$0xff]  ;;  %v816_v13 = vld [vmem:[%s1683_s26 + $0x8] sm:$0xf]  ;;  %s1598_s29 = smov 10  }
  0x11   : > { %v690_v12 = vld [vmem:[%s447_s14] sm:$0xff]  ;;  %v886_v17 = vld [vmem:[%s1677_s23 + $0x8] sm:$0xf]  ;;  %s1601_s14 = smov 8   ;;  %vm1254_vm11 = vcmask 982016   ;;  %s1877_s18 = smov (!%p449_p4, %s1669_s18), 1 }
  0x12   : > { %v955_v21 = vld [vmem:[%s1683_s26 + $0x8] sm:$0xf]  ;;  %v1032_v46 = vld [vmem:[%s1869_s7] sm:$0xff] }
  0x13   : > { %v1500_v63 = vld [vmem:[%s1867_s5 + $0x40] sm:$0xff] }
  0x16   : > { %v1686_v2 = vld.sshfl [vmem:[#allocation1] sm:$0xff pattern:$0x75316420]  ;;  %v1688_v3 = vld.sshfl [vmem:[#allocation1 + $0x8] sm:$0xff pattern:$0x75316420] }
  0x17   : > { %512 = vst [vmem:[#allocation1] ss:$2 sm:$0xff] %v454_v1  ;;  %v573_v10 = vld.sshfl [vmem:[#allocation1 + $0x10] sm:$0xff pattern:$0x75316420]  ;;  %1462 = vmatpush.msk.msra.mxu0 %vm466_vm0, %v1686_v2  ;;  %1464 = vmatpush.msk.msra.mxu1 %vm466_vm0, %v1688_v3 }
  0x18   : > { %578 = vrot.lane.b32.xlu2 %v573_v10, %s1593_s30  ;;  %752 = vst [vmem:[#allocation1 + $0x10] ss:$2 sm:$0xff] %v747_v11  ;;  %1463 = vmatmul.msk.f32.vlgmr.msra.gmra.mxu0 %vm462_vm1, %v1461_v32 }
  0x19   : > { %1465 = vmatmul.msk.f32.vlgmr.msra.gmra.mxu1 %vm462_vm1, %v1461_v32 }
  0x1e   : > { %v1690_v4 = vld.sshfl [vmem:[#allocation1] sm:$0xff pattern:$0x75316420]  ;;  %v1692_v5 = vld.sshfl [vmem:[#allocation1 + $0x8] sm:$0xff pattern:$0x75316420] }
  0x1f   : > { %568 = vst [vmem:[#allocation1] ss:$2 sm:$0xff] %v454_v1  ;;  %v755_v16 = vld.sshfl [vmem:[#allocation1 + $0x10] sm:$0xff pattern:$0x75316420]  ;;  %1466 = vmatpush.msk.msra.mxu2 %vm466_vm0, %v1690_v4  ;;  %1468 = vmatpush.msk.msra.mxu3 %vm466_vm0, %v1692_v5 }
  0x20   : > { %821 = vst [vmem:[#allocation1 + $0x10] ss:$2 sm:$0xff] %v816_v13  ;;  %1467 = vmatmul.msk.f32.vlgmr.msra.gmra.mxu2 %vm462_vm1, %v453_v33  ;;  %1469 = vmatmul.msk.f32.vlgmr.msra.gmra.mxu3 %vm462_vm1, %v453_v33 }
  0x26   : > { %v571_v8 = vld.sshfl [vmem:[#allocation1] sm:$0xff pattern:$0x75316420]  ;;  %v572_v9 = vld.sshfl [vmem:[#allocation1 + $0x8] sm:$0xff pattern:$0x75316420] }
  0x27   : > { %574 = vrot.lane.b32.xlu0 %v571_v8, %s1593_s30  ;;  %636 = vst [vmem:[#allocation1] ss:$2 sm:$0xff] %v634_v7  ;;  %v824_v20 = vld.sshfl [vmem:[#allocation1 + $0x10] sm:$0xff pattern:$0x75316420] }
  0x28   : > { %891 = vst [vmem:[#allocation1 + $0x10] ss:$2 sm:$0xff] %v886_v17 }
  0x2e   : > { %v637_v14 = vld.sshfl [vmem:[#allocation1] sm:$0xff pattern:$0x75316420]  ;;  %v638_v15 = vld.sshfl [vmem:[#allocation1 + $0x8] sm:$0xff pattern:$0x75316420] }
  0x2f   : > { %576 = vrot.lane.b32.xlu0 %v572_v9, %s1593_s30  ;;  %692 = vst [vmem:[#allocation1] ss:$2 sm:$0xff] %v690_v12  ;;  %v894_v24 = vld.sshfl [vmem:[#allocation1 + $0x10] sm:$0xff pattern:$0x75316420]  ;;  %1476 = vmatpush.msk.msrb.mxu2 %vm466_vm0, %v637_v14 }
  0x30   : > { %960 = vst [vmem:[#allocation1 + $0x10] ss:$2 sm:$0xff] %v955_v21  ;;  %1478 = vmatpush.msk.msrb.mxu3 %vm466_vm0, %v638_v15  ;;  %1477 = vmatmul.msk.f32.vlgmr.msrb.gmra.mxu2 %vm462_vm1, %v1475_v34 }
  0x31   : > { %1479 = vmatmul.msk.f32.vlgmr.msrb.gmra.mxu3 %vm462_vm1, %v1475_v34 }
  0x36   : > { %v693_v18 = vld.sshfl [vmem:[#allocation1] sm:$0xff pattern:$0x75316420]  ;;  %v694_v19 = vld.sshfl [vmem:[#allocation1 + $0x8] sm:$0xff pattern:$0x75316420] }
  0x37   : > { %750 = vst [vmem:[#allocation1] ss:$2 sm:$0xff] %v634_v7  ;;  %v963_v31 = vld.sshfl [vmem:[#allocation1 + $0x10] sm:$0xff pattern:$0x75316420] }
  0x3e   : > { %v753_v22 = vld.sshfl [vmem:[#allocation1] sm:$0xff pattern:$0x75316420]  ;;  %v754_v23 = vld.sshfl [vmem:[#allocation1 + $0x8] sm:$0xff pattern:$0x75316420] }
  0x3f   : > { %756 = vrot.lane.b32.xlu1 %v753_v22, %s1593_s30  ;;  %819 = vst [vmem:[#allocation1] ss:$2 sm:$0xff] %v454_v1 }
  0x46   : > { %v823_v25 = vld.sshfl [vmem:[#allocation1 + $0x8] sm:$0xff pattern:$0x75316420]  ;;  %v822_v26 = vld.sshfl [vmem:[#allocation1] sm:$0xff pattern:$0x75316420] }
  0x47   : > { %758 = vrot.lane.b32.xlu1 %v754_v23, %s1593_s30  ;;  %827 = vrot.lane.b32.xlu0 %v823_v25, %s1594_s15  ;;  %889 = vst [vmem:[#allocation1] ss:$2 sm:$0xff] %v457_v0 }
  0x48   : > { %825 = vrot.lane.b32.xlu2 %v822_v26, %s1594_s15 }
  0x4e   : > { %v892_v27 = vld.sshfl [vmem:[#allocation1] sm:$0xff pattern:$0x75316420]  ;;  %v893_v28 = vld.sshfl [vmem:[#allocation1 + $0x8] sm:$0xff pattern:$0x75316420] }
  0x4f   : > { %760 = vrot.lane.b32.xlu0 %v755_v16, %s1593_s30  ;;  %895 = vrot.lane.b32.xlu1 %v892_v27, %s1594_s15  ;;  %958 = vst [vmem:[#allocation1] ss:$2 sm:$0xff] %v454_v1 }
  0x50   : > { %897 = vrot.lane.b32.xlu2 %v893_v28, %s1594_s15 }
  0x56   : > { %v961_v29 = vld.sshfl [vmem:[#allocation1] sm:$0xff pattern:$0x75316420]  ;;  %v962_v30 = vld.sshfl [vmem:[#allocation1 + $0x8] sm:$0xff pattern:$0x75316420] }
  0x57   : > { %829 = vrot.lane.b32.xlu0 %v824_v20, %s1594_s15  ;;  %964 = vrot.lane.b32.xlu1 %v961_v29, %s1595_s16 }
  0x58   : > { %966 = vrot.lane.b32.xlu2 %v962_v30, %s1595_s16  ;;  %v1042_v30 = vld [vmem:[%s1866_s4] sm:$0x3] }
  0x59   : > { %v1044_v34 = vperm.slane %v1042_v30, 0 }
  0x5f   : > { %899 = vrot.lane.b32.xlu1 %v894_v24, %s1594_s15  ;;  %1025 = vperm.xlu0 %1542, %v1022_v45  }
  0x60   : > { %968 = vrot.lane.b32.xlu2 %v963_v31, %s1595_s16 }
  0x67   : > { %1035 = vperm.xlu1 %1543, %v1032_v46  }
  0x72   : > { %v579_v36 = vpop.permute.xlu2 %578 }
  0x95   : > { %v488_v5 = vpop.f32.mrf.mxu0 }
  0x96   : > { %v508_v8 = vpop.f32.mrf.mxu1 }
  0x99   : > { %v575_v35 = vpop.permute.xlu0 %574 }
  0xa1   : > { %v577_v37 = vpop.permute.xlu0 %576 }
  0xa2   : > { %v581_v39 = vsel %vm580_vm2, %v575_v35, %v577_v37  ;;  %v582_v40 = vsel %vm580_vm2, %v577_v37, %v579_v36  ;;  %v826_v41 = vpop.permute.xlu2 %825 }
  0xa3   : > { %1471 = vmatpush.msk.msrb.mxu0 %vm466_vm0, %v581_v39  ;;  %1473 = vmatpush.msk.msrb.mxu1 %vm466_vm0, %v582_v40  ;;  %v539_v6 = vpop.f32.mrf.mxu2  ;;  %v559_v13 = vpop.f32.mrf.mxu3 }
  0xa4   : > { %1472 = vmatmul.msk.f32.vlgmr.msrb.gmra.mxu0 %vm462_vm1, %v1470_v38  ;;  %1474 = vmatmul.msk.f32.vlgmr.msrb.gmra.mxu1 %vm462_vm1, %v1470_v38  ;;  %v540_v9 = vadd.f32 %v539_v6, %v488_v5  ;;  %v560_v20 = vadd.f32 %v559_v13, %v508_v8  ;;  %v1520_v6 = vld [vmem:[%s1870_s8 + $0x40] sm:$0xff] }
  0xa5   : > { %1481 = vmatpush.msk.msra.mxu0 %vm466_vm0, %v693_v18  ;;  %1483 = vmatpush.msk.msra.mxu1 %vm466_vm0, %v694_v19 }
  0xaa   : > { %v898_v44 = vpop.permute.xlu2 %897 }
  0xac   : > { %1482 = vmatmul.msk.f32.vlgmr.msra.gmra.mxu0 %vm462_vm1, %v1480_v42  ;;  %1484 = vmatmul.msk.f32.vlgmr.msra.gmra.mxu1 %vm462_vm1, %v1480_v42  ;;  %v1597_v42 = vmov 0.0  }
  0xb1   : > { %v757_v43 = vpop.permute.xlu1 %756 }
  0xb2   : > { %v967_v54 = vpop.permute.xlu2 %966 }
  0xb3   : > { %v663_v10 = vpop.f32.mrf.mxu2 }
  0xb4   : > { %v683_v21 = vpop.f32.mrf.mxu3 }
  0xb9   : > { %v759_v48 = vpop.permute.xlu1 %758  ;;  %v828_v49 = vpop.permute.xlu0 %827 }
  0xba   : > { %v762_v52 = vsel %vm580_vm2, %v757_v43, %v759_v48  ;;  %v832_v53 = vsel %vm831_vm3, %v826_v41, %v828_v49  ;;  %v969_v60 = vpop.permute.xlu2 %968 }
  0xbb   : > { %1486 = vmatpush.msk.msra.mxu2 %vm466_vm0, %v762_v52  ;;  %1491 = vmatpush.msk.msrb.mxu0 %vm466_vm0, %v832_v53  ;;  %v972_v2 = vsel %vm970_vm4, %v967_v54, %v969_v60  ;;  %v1505_v60 = vld [vmem:[%s1870_s8 + $0x8] sm:$0xff] }
  0xbc   : > { %1487 = vmatmul.msk.f32.vlgmr.msra.gmra.mxu2 %vm462_vm1, %v1485_v50  ;;  %1492 = vmatmul.msk.f32.vlgmr.msrb.gmra.mxu0 %vm462_vm1, %v1490_v51 }
  0xc1   : > { %v761_v55 = vpop.permute.xlu0 %760  ;;  %v896_v56 = vpop.permute.xlu1 %895 }
  0xc2   : > { %v763_v58 = vsel %vm580_vm2, %v759_v48, %v761_v55  ;;  %v901_v59 = vsel %vm831_vm3, %v896_v56, %v898_v44  ;;  %v1353_v55 = vld [vmem:[%s1872_s10] sm:$0xff] }
  0xc3   : > { %1488 = vmatpush.msk.msra.mxu3 %vm466_vm0, %v763_v58  ;;  %1496 = vmatpush.msk.msrb.mxu2 %vm466_vm0, %v901_v59 }
  0xc4   : > { %1489 = vmatmul.msk.f32.vlgmr.msra.gmra.mxu3 %vm462_vm1, %v1485_v50  ;;  %1497 = vmatmul.msk.f32.vlgmr.msrb.gmra.mxu2 %vm462_vm1, %v1495_v57  ;;  %v1045_v50 = vperm.slane %v1042_v30, 1 }
  0xc9   : > { %v830_v61 = vpop.permute.xlu0 %829  ;;  %v965_v62 = vpop.permute.xlu1 %964 }
  0xca   : > { %v833_v0 = vsel %vm831_vm3, %v828_v49, %v830_v61  ;;  %v971_v1 = vsel %vm970_vm4, %v965_v62, %v967_v54 }
  0xcb   : > { %1493 = vmatpush.msk.msrb.mxu1 %vm466_vm0, %v833_v0  ;;  %1501 = vmatpush.msk.msra.mxu0 %vm466_vm0, %v971_v1  ;;  %v1512_v1 = vld [vmem:[%s1870_s8 + $0x20] sm:$0xff] }
  0xcc   : > { %1494 = vmatmul.msk.f32.vlgmr.msrb.gmra.mxu1 %vm462_vm1, %v1490_v51  ;;  %1502 = vmatmul.msk.f32.vlgmr.msra.gmra.mxu0 %vm462_vm1, %v1500_v63 }
  0xcd   : > { %1503 = vmatpush.msk.msra.mxu1 %vm466_vm0, %v972_v2  ;;  %v1508_v2 = vld [vmem:[%s1870_s8 + $0x10] sm:$0xff] }
  0xd1   : > { %v900_v3 = vpop.permute.xlu1 %899  ;;  %v1026_v28 = vpop.permute.xlu0 %1025 }
  0xd2   : > { %v902_v4 = vsel %vm831_vm3, %v898_v44, %v900_v3 }
  0xd3   : > { %1498 = vmatpush.msk.msrb.mxu3 %vm466_vm0, %v902_v4 }
  0xd4   : > { %1499 = vmatmul.msk.f32.vlgmr.msrb.gmra.mxu3 %vm462_vm1, %v1495_v57  ;;  %1504 = vmatmul.msk.f32.vlgmr.msra.gmra.mxu1 %vm462_vm1, %v1500_v63 }
  0xd9   : > { %v1036_v31 = vpop.permute.xlu1 %1035 }
 0x121   : > { %v607_v7 = vpop.f32.mrf.mxu0  ;;  %v627_v15 = vpop.f32.mrf.mxu1 }
 0x122   : > { %v630_v12 = vadd.f32 %v607_v7, %v540_v9  ;;  %v631_v25 = vadd.f32 %v627_v15, %v560_v20  ;;  %v1345_v9 = vld [vmem:[%s1871_s9] sm:$0xff] }
 0x124   : > { %v686_v14 = vadd.f32 %v663_v10, %v630_v12  ;;  %v687_v32 = vadd.f32 %v683_v21, %v631_v25  ;;  %v1053_v12 = vld [vmem:[%s1870_s8] sm:$0xff]  ;;  %v1514_v25 = vld [vmem:[%s1870_s8 + $0x28] sm:$0xff] }
 0x129   : > { %v719_v11 = vpop.f32.mrf.mxu0  ;;  %v739_v23 = vpop.f32.mrf.mxu1 }
 0x12a   : > { %v742_v18 = vadd.f32 %v719_v11, %v686_v14  ;;  %v743_v38 = vadd.f32 %v739_v23, %v687_v32  ;;  %v1516_v32 = vld [vmem:[%s1870_s8 + $0x30] sm:$0xff] }
 0x139   : > { %v858_v17 = vpop.f32.mrf.mxu0 }
 0x13f   : > { %v788_v16 = vpop.f32.mrf.mxu2 }
 0x140   : > { %v811_v19 = vadd.f32 %v788_v16, %v742_v18 }
 0x142   : > { %v881_v22 = vadd.f32 %v858_v17, %v811_v19  ;;  %v1510_v17 = vld [vmem:[%s1870_s8 + $0x18] sm:$0xff] }
 0x147   : > { %v927_v24 = vpop.f32.mrf.mxu2  ;;  %v808_v36 = vpop.f32.mrf.mxu3 }
 0x148   : > { %v950_v26 = vadd.f32 %v927_v24, %v881_v22  ;;  %v812_v41 = vadd.f32 %v808_v36, %v743_v38 }
 0x149   : > { %v997_v27 = vpop.f32.mrf.mxu0  ;;  %v878_v37 = vpop.f32.mrf.mxu1 }
 0x14a   : > { %v1020_v29 = vadd.f32 %v997_v27, %v950_v26  ;;  %v882_v44 = vadd.f32 %v878_v37, %v812_v41  ;;  %v1518_v26 = vld [vmem:[%s1870_s8 + $0x38] sm:$0xff] }
 0x14c   : > { %v1028_v33 = vadd.f32 %v1026_v28, %v1020_v29 }
 0x14e   : > { %vm1030_vm5 = vcmp.ge.f32.partialorder %v1028_v33, 0.0  ;;  %v1038_v35 = vmul.f32 %v1036_v31, %v1028_v33 }
 0x150   : > { %v1040_v39 = vsel %vm1030_vm5, %v1028_v33, %v1038_v35 }
 0x151   : > { %v1048_v40 = vmul.f32 %v1044_v34, %v1040_v39  ;;  %v1017_v46 = vpop.f32.mrf.mxu1 }
 0x153   : > { %v1549_v43 = vpack.i.bf16 %v1048_v40, %v1597_v42 }
 0x155   : > { %1550 = vrot.lane.b32.xlu1 %v1549_v43, %s1598_s29  ;;  %1545 = vrot.lane.b32.xlu2 %v1549_v43, %s1599_s12 }
 0x157   : > { %v947_v45 = vpop.f32.mrf.mxu3 }
 0x158   : > { %v951_v47 = vadd.f32 %v947_v45, %v882_v44 }
 0x15a   : > { %v1021_v48 = vadd.f32 %v1017_v46, %v951_v47 }
 0x15c   : > { %v1029_v49 = vadd.f32 %v1026_v28, %v1021_v48 }
 0x15d   : > { %1565 = vrot.lane.b32.xlu1 %v1549_v43, %s1600_s13  ;;  %1555 = vrot.lane.b32.xlu2 %v1549_v43, %s1601_s14 }
 0x15e   : > { %vm1031_vm6 = vcmp.ge.f32.partialorder %v1029_v49, 0.0  ;;  %v1039_v51 = vmul.f32 %v1036_v31, %v1029_v49 }
 0x160   : > { %v1041_v52 = vsel %vm1031_vm6, %v1029_v49, %v1039_v51 }
 0x161   : > { %v1049_v53 = vmul.f32 %v1045_v50, %v1041_v52 }
 0x163   : > { %v1559_v54 = vpack.i.bf16 %v1049_v53, %v1048_v40 }
 0x165   : > { %1560 = vrot.lane.b32.xlu0 %v1559_v54, %s1593_s30  ;;  %1580 = vrot.lane.b32.xlu1 %v1559_v54, %s1594_s15  ;;  %s1460_s15 = sshll.u32 %s1877_s18, 3 }
 0x166   : > { %1570 = vrot.lane.b32.xlu2 %v1559_v54, %s1595_s16  ;;  %s452_s25 = scalar_lea.vmem %s1873_s11, %s1460_s15 }
 0x16d   : > { %1575 = vrot.lane.b32.xlu0 %v1559_v54, %s1602_s19 }
 0x16e   : > { %1348 = vperm.xlu2 %1584, %v1345_v9  }
 0x175   : > { %1356 = vperm.xlu0 %1542, %v1353_v55  }
 0x1af   : > { %v1546_v56 = vpop.permute.xlu2 %1545 }
 0x1b0   : > { %v1548_v57 = vunpack.i.h.bf16 %v1546_v56  ;;  %v1547_v58 = vunpack.i.l.bf16 %v1546_v56 }
 0x1b2   : > { %v1065_v59 = vsel %vm1064_vm7, %v1547_v58, %v1548_v57 }
 0x1b3   : > { %1086 = vmatpush.msra.mxu2 %v1065_v59 }
 0x1b4   : > { %1506 = vmatmul.msk.f32.vlgmr.msra.gmra.mxu2 %vm1067_vm8, %v1505_v60 }
 0x1b5   : > { %1206 = vmatpush.msrb.mxu2 %v1048_v40 }
 0x1b7   : > { %v1556_v61 = vpop.permute.xlu2 %1555 }
 0x1b8   : > { %v1558_v62 = vunpack.i.h.bf16 %v1556_v61  ;;  %v1557_v63 = vunpack.i.l.bf16 %v1556_v61 }
 0x1ba   : > { %v1127_v0 = vsel %vm1067_vm8, %v1557_v63, %v1558_v62 }
 0x1bb   : > { %1147 = vmatpush.msrb.mxu0 %v1127_v0 }
 0x1bc   : > { %1509 = vmatmul.msk.f32.vlgmr.msrb.gmra.mxu0 %vm1067_vm8, %v1508_v2  ;;  %1513 = vmatmul.msk.f32.vlgmr.msrb.gmra.mxu2 %vm1067_vm8, %v1512_v1 }
 0x1c0   : > { %v1571_v3 = vpop.permute.xlu2 %1570 }
 0x1c1   : > { %v1573_v4 = vunpack.i.h.bf16 %v1571_v3  ;;  %v1572_v5 = vunpack.i.l.bf16 %v1571_v3 }
 0x1c3   : > { %v1319_v7 = vsel %vm970_vm4, %v1572_v5, %v1573_v4 }
 0x1c4   : > { %1339 = vmatpush.msra.mxu2 %v1319_v7 }
 0x1c5   : > { %1521 = vmatmul.msk.f32.vlgmr.msra.gmra.mxu2 %vm1067_vm8, %v1520_v6 }
 0x1c7   : > { %v1551_v8 = vpop.permute.xlu1 %1550 }
 0x1c8   : > { %v1553_v10 = vunpack.i.h.bf16 %v1551_v8  ;;  %v1552_v11 = vunpack.i.l.bf16 %v1551_v8  ;;  %v1349_v50 = vpop.permute.xlu2 %1348 }
 0x1ca   : > { %v1096_v13 = vsel %vm1095_vm9, %v1552_v11, %v1553_v10 }
 0x1cb   : > { %1116 = vmatpush.msra.mxu3 %v1096_v13 }
 0x1cc   : > { %1507 = vmatmul.msk.f32.vlgmr.msra.gmra.mxu3 %vm1067_vm8, %v1053_v12 }
 0x1cf   : > { %v1566_v14 = vpop.permute.xlu1 %1565 }
 0x1d0   : > { %v1568_v15 = vunpack.i.h.bf16 %v1566_v14  ;;  %v1567_v16 = vunpack.i.l.bf16 %v1566_v14 }
 0x1d2   : > { %v1160_v18 = vsel %vm1159_vm10, %v1567_v16, %v1568_v15 }
 0x1d3   : > { %1180 = vmatpush.msrb.mxu1 %v1160_v18 }
 0x1d4   : > { %1511 = vmatmul.msk.f32.vlgmr.msrb.gmra.mxu1 %vm1067_vm8, %v1510_v17 }
 0x1d7   : > { %v1561_v19 = vpop.permute.xlu0 %1560  ;;  %v1581_v20 = vpop.permute.xlu1 %1580 }
 0x1d8   : > { %v1563_v21 = vunpack.i.h.bf16 %v1561_v19  ;;  %v1562_v22 = vunpack.i.l.bf16 %v1561_v19  ;;  %v1583_v23 = vunpack.i.h.bf16 %v1581_v20  ;;  %v1582_v24 = vunpack.i.l.bf16 %v1581_v20 }
 0x1da   : > { %v1222_v27 = vsel %vm580_vm2, %v1562_v22, %v1563_v21  ;;  %v1287_v28 = vsel %vm831_vm3, %v1582_v24, %v1583_v23 }
 0x1db   : > { %1242 = vmatpush.msrb.mxu3 %v1222_v27  ;;  %1307 = vmatpush.msra.mxu1 %v1287_v28 }
 0x1dc   : > { %1515 = vmatmul.msk.f32.vlgmr.msrb.gmra.mxu3 %vm1067_vm8, %v1514_v25  ;;  %1519 = vmatmul.msk.f32.vlgmr.msra.gmra.mxu1 %vm1067_vm8, %v1518_v26 }
 0x1df   : > { %v1576_v29 = vpop.permute.xlu0 %1575 }
 0x1e0   : > { %v1578_v30 = vunpack.i.h.bf16 %v1576_v29  ;;  %v1577_v31 = vunpack.i.l.bf16 %v1576_v29 }
 0x1e2   : > { %v1255_v33 = vsel %vm1254_vm11, %v1577_v31, %v1578_v30 }
 0x1e3   : > { %1275 = vmatpush.msra.mxu0 %v1255_v33 }
 0x1e4   : > { %1517 = vmatmul.msk.f32.vlgmr.msra.gmra.mxu0 %vm1067_vm8, %v1516_v32 }
 0x1e7   : > { %v1357_v53 = vpop.permute.xlu0 %1356 }
 0x237   : > { %v1088_v35 = vpop.f32.mrf.mxu2 }
 0x239   : > { %v1149_v37 = vpop.f32.mrf.mxu0 }
 0x23f   : > { %v1208_v41 = vpop.f32.mrf.mxu2 }
 0x248   : > { %v1341_v48 = vpop.f32.mrf.mxu2 }
 0x24f   : > { %v1118_v34 = vpop.f32.mrf.mxu3 }
 0x250   : > { %v1119_v36 = vadd.f32 %v1118_v34, %v1088_v35 }
 0x251   : > { %v1182_v39 = vpop.f32.mrf.mxu1 }
 0x252   : > { %v1152_v38 = vadd.f32 %v1149_v37, %v1119_v36 }
 0x254   : > { %v1185_v40 = vadd.f32 %v1182_v39, %v1152_v38 }
 0x256   : > { %v1211_v42 = vadd.f32 %v1208_v41, %v1185_v40 }
 0x259   : > { %v1309_v46 = vpop.f32.mrf.mxu1 }
 0x25f   : > { %v1244_v43 = vpop.f32.mrf.mxu3 }
 0x260   : > { %v1247_v44 = vadd.f32 %v1244_v43, %v1211_v42 }
 0x261   : > { %v1277_v45 = vpop.f32.mrf.mxu0 }
 0x262   : > { %v1280_v47 = vadd.f32 %v1277_v45, %v1247_v44 }
 0x264   : > { %v1312_v49 = vadd.f32 %v1309_v46, %v1280_v47 }
 0x266   : > { %v1344_v51 = vadd.f32 %v1341_v48, %v1312_v49 }
 0x268   : > { %v1351_v52 = vadd.f32 %v1349_v50, %v1344_v51 }
 0x26a   : > { %vm1352_vm12 = vcmp.ge.f32.partialorder %v1351_v52, 0.0  ;;  %v1359_v54 = vmul.f32 %v1357_v53, %v1351_v52 }
 0x26c   : > { %v1360_v55 = vsel %vm1352_vm12, %v1351_v52, %v1359_v54 }
 0x26d   : > { %1361 = vst [vmem:[%s452_s25] sm:$0xff] %v1360_v55 }
 0x26e PF: > { %s21_s17 = sadd.s32 1, %s1591_s17  }
 0x26f   : > { %p18_p5 = scmp.ge.s32.totalorder %s21_s17, 4  }
 0x271   :  { %20 = sbr.rel (!%p18_p5) target bundleno = 1 (0x1), region = 124 }

</bundles_post_ra>
